<compile_context>
chip_gen: v7x
topology: tpu7x:2x2x1
jax: 0.10.0
libtpu: 0.0.40
codegen_flags: <defaults>
</compile_context>

<pallas_src>
import functools

import jax
import jax.numpy as jnp
from jax.experimental import pallas as pl
from jax.experimental.pallas import tpu as pltpu

KEY_DIM = 16
QUERY_DIM = 16
VALUE_DIM = 16
SCALE = KEY_DIM ** (-0.5)
DROPOUT_P = 0.1  # F.dropout default training=True -> dropout is applied


def _attn_dropout_kernel(q_ref, k_ref, v_ref, bits_ref, o_ref, *, scale, dropout_p):
    # q_ref: (Bt, Lq, D), k_ref/v_ref: (Bt, Lk, D), bits_ref: (Bt, Lq, Lk)
    # Batched scores, contracting the native last dims (no explicit K transpose,
    # no forced f32 upcast of the MXU operands).
    s = jnp.einsum(
        "bqd,bkd->bqk", q_ref[...], k_ref[...],
        preferred_element_type=jnp.float32,
    ) * scale

    # Numerically stable softmax over the key axis (f32).
    s = s - jnp.max(s, axis=-1, keepdims=True)
    p = jnp.exp(s)
    inv = pl.reciprocal(jnp.sum(p, axis=-1, keepdims=True), approx=True)
    # Fold the dropout survivor scale 1/(1-p) into the same normalization multiply.
    p = p * (inv * (1.0 / (1.0 - dropout_p)))

    # Dropout decided in the integer domain: keep iff bits >= round(p * 2^32).
    thresh = jnp.uint32(min(int(round(dropout_p * 2.0 ** 32)), 2 ** 32 - 1))
    keep = bits_ref[...] >= thresh
    p = jnp.where(keep, p, 0.0)

    # output = dropout(softmax(scores)) @ V
    o_ref[...] = jnp.einsum(
        "bqk,bkd->bqd", p.astype(v_ref.dtype), v_ref[...],
        preferred_element_type=jnp.float32,
    ).astype(o_ref.dtype)


def _pick_batch_block(batch, per_batch_bytes, vmem_budget=4 << 20):
    # Amortize the ~0.35us per-grid-step overhead: take as many batch elements
    # per step as comfortably fit the VMEM budget (sized for v7x's smaller VMEM).
    bt = max(1, min(batch, vmem_budget // max(per_batch_bytes, 1)))
    while batch % bt:
        bt -= 1
    return bt


def sdpa_dropout(query, key, value, dropout_rng, *, scale=SCALE,
                 dropout_p=DROPOUT_P, batch_block=None):
    B, Lq, D = query.shape
    Bk, Lk, Dk = key.shape
    assert Bk == B and Dk == D and value.shape == (B, Lk, D)

    # Portable dropout bits (uint32), one per attention score.
    dropout_bits = jax.random.bits(dropout_rng, (B, Lq, Lk), dtype=jnp.uint32)

    per_batch_bytes = (
        Lq * D * query.dtype.itemsize          # q tile
        + 2 * Lk * D * key.dtype.itemsize      # k + v tiles
        + Lq * Lk * 4                          # random bits
        + Lq * D * query.dtype.itemsize        # output tile
        + 3 * Lq * Lk * 4                      # f32 score / exp / mask temps
    )
    if batch_block is None:
        batch_block = _pick_batch_block(B, per_batch_bytes)
    assert B % batch_block == 0
    grid = (B // batch_block,)

    kernel = functools.partial(_attn_dropout_kernel, scale=scale, dropout_p=dropout_p)

    grid_spec = pltpu.PrefetchScalarGridSpec(
        num_scalar_prefetch=0,
        grid=grid,
        in_specs=[
            pl.BlockSpec((batch_block, Lq, D), lambda b: (b, 0, 0)),
            pl.BlockSpec((batch_block, Lk, D), lambda b: (b, 0, 0)),
            pl.BlockSpec((batch_block, Lk, D), lambda b: (b, 0, 0)),
            pl.BlockSpec((batch_block, Lq, Lk), lambda b: (b, 0, 0)),
        ],
        out_specs=pl.BlockSpec((batch_block, Lq, D), lambda b: (b, 0, 0)),
    )

    bytes_accessed = (
        query.size * query.dtype.itemsize
        + key.size * key.dtype.itemsize
        + value.size * value.dtype.itemsize
        + dropout_bits.size * 4
        + B * Lq * D * query.dtype.itemsize
    )
    cost = pl.CostEstimate(
        flops=4 * B * Lq * Lk * D,          # qk matmul + pv matmul
        transcendentals=B * Lq * Lk,        # exp in softmax
        bytes_accessed=bytes_accessed,
    )

    return pl.pallas_call(
        kernel,
        out_shape=jax.ShapeDtypeStruct((B, Lq, D), query.dtype),
        grid_spec=grid_spec,
        compiler_params=pltpu.CompilerParams(
            # No cross-iteration state (random bits are a plain input), so the
            # batch axis can be sharded across v7x's two TensorCores.
            dimension_semantics=("parallel",),
        ),
        cost_estimate=cost,
    )(query, key, value, dropout_bits)

    # TODO(synk): for realistic Lq/Lk, add Lq/Lk tiling with flash-style online
    # softmax sized for v7x's 64 MiB VMEM; unnecessary at these shapes.


if __name__ == "__main__":
    rng = jax.random.PRNGKey(0)
    q_key, drop_key = jax.random.split(rng)

    # Shapes consistent with the module's example inputs.
    query = jax.random.normal(q_key, (1, 5, QUERY_DIM), dtype=jnp.float32)
    key = jnp.zeros((1, 4, KEY_DIM), dtype=jnp.float32)
    value = jnp.zeros((1, 4, VALUE_DIM), dtype=jnp.float32)

    out = sdpa_dropout(query, key, value, drop_key)
    jax.block_until_ready(out)

    assert out.shape == (1, 5, VALUE_DIM)
    print("KERNEL_OK")
</pallas_src>

<mosaic_0001>
module attributes {stable_mosaic.version = 11 : i64} {
  func.func @_attn_dropout_kernel(%arg0: i32, %arg1: memref<1x5x16xf32, #tpu.memory_space<vmem>>, %arg2: memref<1x4x16xf32, #tpu.memory_space<vmem>>, %arg3: memref<1x4x16xf32, #tpu.memory_space<vmem>>, %arg4: memref<1x5x4xi32, #tpu.memory_space<vmem>>, %arg5: memref<1x5x16xf32, #tpu.memory_space<vmem>>) attributes {dimension_semantics = [#tpu.dimension_semantics<parallel>], iteration_bounds = array<i64: 1>, scalar_prefetch = 0 : i64, scratch_operands = 0 : i64, tpu.core_type = #tpu.core_type<tc>, window_params = [{transform_indices = @transform_0, window_bounds = array<i64: 1, 5, 16>}, {transform_indices = @transform_1, window_bounds = array<i64: 1, 4, 16>}, {transform_indices = @transform_2, window_bounds = array<i64: 1, 4, 16>}, {transform_indices = @transform_3, window_bounds = array<i64: 1, 5, 4>}, {transform_indices = @transform_4, window_bounds = array<i64: 1, 5, 16>}]} {
    %c0 = arith.constant 0 : index
    %c0_0 = arith.constant 0 : index
    %c0_1 = arith.constant 0 : index
    %0 = vector.load %arg1[%c0, %c0_0, %c0_1] : memref<1x5x16xf32, #tpu.memory_space<vmem>>, vector<1x5x16xf32>
    %c0_2 = arith.constant 0 : index
    %c0_3 = arith.constant 0 : index
    %c0_4 = arith.constant 0 : index
    %1 = vector.load %arg2[%c0_2, %c0_3, %c0_4] : memref<1x4x16xf32, #tpu.memory_space<vmem>>, vector<1x4x16xf32>
    "tpu.trace_start"() <{level = 10 : i32, message = "bqd,bkd->bqk"}> : () -> ()
    %cst = arith.constant dense<0.000000e+00> : vector<1x5x4xf32>
    %2 = tpu.matmul %0, %1, %cst {dimension_numbers = #tpu.dot_dimension_numbers<[2], [2], [1], [1], [0, 0, 0, 1, 1, 1], [0], [0]>} : vector<1x5x16xf32>, vector<1x4x16xf32>, vector<1x5x4xf32> -> vector<1x5x4xf32>
    "tpu.trace_stop"() : () -> ()
    %cst_5 = arith.constant 2.500000e-01 : f32
    %3 = vector.broadcast %cst_5 : f32 to vector<1x5x4xf32>
    %4 = arith.mulf %2, %3 : vector<1x5x4xf32>
    %cst_6 = arith.constant dense<0xFF800000> : vector<1x5xf32>
    %5 = vector.multi_reduction <maximumf>, %4, %cst_6 [2] : vector<1x5x4xf32> to vector<1x5xf32>
    %6 = vector.shape_cast %5 : vector<1x5xf32> to vector<1x5x1xf32>
    %7 = vector.broadcast %6 : vector<1x5x1xf32> to vector<1x5x4xf32>
    %8 = arith.subf %4, %7 : vector<1x5x4xf32>
    %9 = math.exp %8 : vector<1x5x4xf32>
    %cst_7 = arith.constant dense<0.000000e+00> : vector<1x5xf32>
    %10 = vector.multi_reduction <add>, %9, %cst_7 [2] : vector<1x5x4xf32> to vector<1x5xf32>
    %11 = vector.shape_cast %10 : vector<1x5xf32> to vector<1x5x1xf32>
    %12 = tpu.reciprocal %11 {approx = true} : vector<1x5x1xf32> -> vector<1x5x1xf32>
    %cst_8 = arith.constant 1.11111116 : f32
    %13 = vector.broadcast %cst_8 : f32 to vector<1x5x1xf32>
    %14 = arith.mulf %12, %13 : vector<1x5x1xf32>
    %15 = vector.broadcast %14 : vector<1x5x1xf32> to vector<1x5x4xf32>
    %16 = arith.mulf %9, %15 : vector<1x5x4xf32>
    %c0_9 = arith.constant 0 : index
    %c0_10 = arith.constant 0 : index
    %c0_11 = arith.constant 0 : index
    %17 = vector.load %arg4[%c0_9, %c0_10, %c0_11] : memref<1x5x4xi32, #tpu.memory_space<vmem>>, vector<1x5x4xi32>
    %c429496730_i32 = arith.constant 429496730 : i32
    %18 = vector.broadcast %c429496730_i32 : i32 to vector<1x5x4xi32>
    %19 = arith.cmpi uge, %17, %18 : vector<1x5x4xi32>
    %cst_12 = arith.constant 0.000000e+00 : f32
    %20 = vector.broadcast %cst_12 : f32 to vector<1x5x4xf32>
    %21 = arith.select %19, %16, %20 : vector<1x5x4xi1>, vector<1x5x4xf32>
    %c0_13 = arith.constant 0 : index
    %c0_14 = arith.constant 0 : index
    %c0_15 = arith.constant 0 : index
    %22 = vector.load %arg3[%c0_13, %c0_14, %c0_15] : memref<1x4x16xf32, #tpu.memory_space<vmem>>, vector<1x4x16xf32>
    "tpu.trace_start"() <{level = 10 : i32, message = "bqk,bkd->bqd"}> : () -> ()
    %cst_16 = arith.constant dense<0.000000e+00> : vector<1x5x16xf32>
    %23 = tpu.matmul %21, %22, %cst_16 {dimension_numbers = #tpu.dot_dimension_numbers<[2], [1], [1], [2], [0, 0, 0, 1, 1, 2], [0], [0]>} : vector<1x5x4xf32>, vector<1x4x16xf32>, vector<1x5x16xf32> -> vector<1x5x16xf32>
    "tpu.trace_stop"() : () -> ()
    %c0_17 = arith.constant 0 : index
    %c0_18 = arith.constant 0 : index
    %c0_19 = arith.constant 0 : index
    %24 = vector.load %arg5[%c0_17, %c0_18, %c0_19] : memref<1x5x16xf32, #tpu.memory_space<vmem>>, vector<1x5x16xf32>
    tpu.vector_store %arg5[%c0_17, %c0_18, %c0_19], %23 {strides = array<i32>} : memref<1x5x16xf32, #tpu.memory_space<vmem>>, vector<1x5x16xf32>,
    return
  }
  func.func @transform_0(%arg0: i32) -> (i32, i32, i32) {
    %c0_i32 = arith.constant 0 : i32
    %c0_i32_0 = arith.constant 0 : i32
    %c0_i32_1 = arith.constant 0 : i32
    return %arg0, %c0_i32, %c0_i32_0 : i32, i32, i32
  }
  func.func @transform_1(%arg0: i32) -> (i32, i32, i32) {
    %c0_i32 = arith.constant 0 : i32
    %c0_i32_0 = arith.constant 0 : i32
    %c0_i32_1 = arith.constant 0 : i32
    return %arg0, %c0_i32, %c0_i32_0 : i32, i32, i32
  }
  func.func @transform_2(%arg0: i32) -> (i32, i32, i32) {
    %c0_i32 = arith.constant 0 : i32
    %c0_i32_0 = arith.constant 0 : i32
    %c0_i32_1 = arith.constant 0 : i32
    return %arg0, %c0_i32, %c0_i32_0 : i32, i32, i32
  }
  func.func @transform_3(%arg0: i32) -> (i32, i32, i32) {
    %c0_i32 = arith.constant 0 : i32
    %c0_i32_0 = arith.constant 0 : i32
    %c0_i32_1 = arith.constant 0 : i32
    return %arg0, %c0_i32, %c0_i32_0 : i32, i32, i32
  }
  func.func @transform_4(%arg0: i32) -> (i32, i32, i32) {
    %c0_i32 = arith.constant 0 : i32
    %c0_i32_0 = arith.constant 0 : i32
    %c0_i32_1 = arith.constant 0 : i32
    return %arg0, %c0_i32, %c0_i32_0 : i32, i32, i32
  }
}

</mosaic_0001>

<bundles_post_ra>
// kernel: tpu_custom_call.1
= control target key start
LH: loop header
LB: loop body
LE: loop exit
PB: predicated region body
PF: predicated region fallthrough
CT: control target
= control target key end

     0   :  { %vm19_vm0 = vcmask 130048   ;;  %v222_v0 = vmov 0.0   ;;  %vm223_vm1 = vmmov 0   ;;  %vm97_vm2 = vcmask 28672   ;;  %s264_s1 = inlined_call_operand.vmem [shape: f32[1,4,16], index: 1, kind: input, shape index: {}]   ;;  %s265_s0 = inlined_call_operand.vmem [shape: f32[1,5,16], index: 0, kind: input, shape index: {}]   ;;  %s266_s2 = inlined_call_operand.vmem [shape: f32[1,4,16], index: 2, kind: input, shape index: {}]   ;;  %s267_s3 = inlined_call_operand.vmem [shape: u32[1,5,4], index: 3, kind: input, shape index: {}]   ;;  %s268_s4 = inlined_call_operand.vmem [shape: f32[1,5,16], index: 4, kind: output, shape index: {}]  }
   0x1   :  { %206 = vmatprep.subr.mxu0 %v222_v0  ;;  %v18_v1 = vld [vmem:[%s264_s1] sm:$0xf]  ;;  %208 = vmatprep.mubr.msk.f32.mxu0 %vm223_vm1, %v222_v0  ;;  %vm118_vm3 = vcmask 1043456   ;;  %vm114_vm5 = vcmask 31744   ;;  %vm192_vm6 = vcmask 126976  }
   0x2   :  { %207 = vmatpush3.xpose.msk.msra.mxu0 %vm19_vm0, %v18_v1  ;;  %v17_v2 = vld [vmem:[%s265_s0] sm:$0x1f]  ;;  %211 = vmatprep.subr.mxu1 %v222_v0 }
   0x3   :  { %213 = vmatprep.mubr.msk.f32.mxu1 %vm223_vm1, %v222_v0  ;;  %v113_v12 = vld [vmem:[%s266_s2] sm:$0xf] }
   0x4   :  { %212 = vmatpush3.msk.msra.mxu1 %vm118_vm3, %v113_v12  ;;  %v110_v14 = vld [vmem:[%s267_s3] sm:$0x1f] }
   0x5   :  { %209 = vmatmul.mubr.msk.f32.vlgmr.msra.gmra.mrb[0].mxu0 %vm19_vm0, %v17_v2  ;;  %vm111_vm4 = vcmp.ge.u32.totalorder %v110_v14, 429496730 }
  0xd8   :  { %v92_v3 = vpop.f32.mrb[0].mxu0 }
  0xd9   :  { %v96_v4 = vmul.f32 0.25, %v92_v3  ;;  %v210_v5 = vpop.f32.mrb[1].mxu0 }
  0xdb   :  { %v98_v6 = vsel %vm97_vm2, %v96_v4, -inf }
  0xdc   :  { %99 = vmax.xlane.f32.xlu0 %v98_v6 }
 0x169   :  { %v100_v7 = vpop.xlane.xlu0 %99 }
 0x16a   :  { %v101_v8 = vsub.f32 %v96_v4, %v100_v7 }
 0x16c   :  { %v102_v9 = vmul.f32 1.442695, %v101_v8 }
 0x16e   :  { %218 = vpow2.f32 %v102_v9 }
 0x178   :  { %v219_v10 = vpop.eup %218 }
 0x179   :  { %v104_v11 = vsel %vm97_vm2, %v219_v10, 0.0 }
 0x17a   :  { %105 = vadd.xlane.f32.xlu0 %v104_v11 }
 0x207   :  { %v106_v13 = vpop.xlane.xlu0 %105 }
 0x208   :  { %220 = vrcp.f32 %v106_v13 }
 0x212   :  { %v221_v15 = vpop.eup %220 }
 0x213   :  { %v108_v16 = vmul.f32 1.1111112, %v221_v15 }
 0x215   :  { %v109_v17 = vmul.f32 %v219_v10, %v108_v16 }
 0x217   :  { %v112_v18 = vsel %vm111_vm4, %v109_v17, 0.0 }
 0x218   :  { %214 = vmatmul.mubr.msk.f32.vlgmr.msra.gmra.mrb[0].mxu1 %vm114_vm5, %v112_v18 }
 0x2eb   :  { %v188_v19 = vpop.f32.mrb[0].mxu1 }
 0x2ec   :  { %193 = vst.msk [vmem:[%s268_s4] sm:$0x1f] %vm192_vm6, %v188_v19  ;;  %v215_v20 = vpop.f32.mrb[1].mxu1 }

</bundles_post_ra>
